<compile_context>
chip_gen: v6e
topology: v6e:2x2x1
jax: 0.10.0
libtpu: 0.0.40
codegen_flags: <defaults>
</compile_context>

<pallas_src>
import functools
import math

import jax
import jax.numpy as jnp
from jax import lax
from jax.experimental import pallas as pl
from jax.experimental.pallas import tpu as pltpu

F_PAD = 128  # lane-dense output width (covers Fout = 4 and 2)


def _round_up(v, m):
    return ((v + m - 1) // m) * m


def _vmem_limit_bytes():
    """Generation-aware scoped-VMEM limit with headroom for Mosaic scratch."""
    try:
        cap = int(pltpu.get_tpu_info().vmem_capacity_bytes)
    except Exception:
        cap = 64 * 1024 * 1024
    return cap * 3 // 4  # ~48 MiB on v7x, ~96 MiB on v5e/v6e


def gcn_agg_kernel(a_ref, z_ref, b_ref, dis_row_ref, out_ref, acc_ref, *,
                   apply_sigmoid):
    """One (row-tile, K-tile) step of  out = dis_row * (A @ z) + b  [+ sigmoid].

    a_ref       : (TM, TK)    int8  streamed tile of (A + I), values in {0, 1}
    z_ref       : (TK, F_PAD) bf16  precomputed dis_src * (feat @ W^T), lane-padded
    b_ref       : (1, F_PAD)  f32   bias, lane-padded (resident)
    dis_row_ref : (TM, 1)     f32   D^{-1/2}, target side (row tile)
    out_ref     : (TM, F_PAD) f32
    acc_ref     : (TM, F_PAD) f32   accumulator scratch
    """
    k = pl.program_id(1)

    @pl.when(k == 0)
    def _():
        acc_ref[...] = jnp.zeros_like(acc_ref)

    # int8 {0,1} -> bf16 is exact; native bf16 x bf16 MXU dot, f32 accumulation.
    a_bf16 = a_ref[...].astype(jnp.bfloat16)
    acc_ref[...] += jnp.dot(a_bf16, z_ref[...],
                            preferred_element_type=jnp.float32)

    @pl.when(k == pl.num_programs(1) - 1)
    def _():
        y = dis_row_ref[...] * acc_ref[...] + b_ref[...]
        if apply_sigmoid:
            y = jax.nn.sigmoid(y)
        out_ref[...] = y


def _gcn_aggregate(a, z, b_pad, dis, *, apply_sigmoid, tm, tk, vmem_limit):
    """K-tiled, row-parallel pallas_call for one GCN aggregation layer."""
    n_pad = a.shape[0]
    kernel = functools.partial(gcn_agg_kernel, apply_sigmoid=apply_sigmoid)

    return pl.pallas_call(
        kernel,
        out_shape=jax.ShapeDtypeStruct((n_pad, F_PAD), jnp.float32),
        grid_spec=pltpu.PrefetchScalarGridSpec(
            num_scalar_prefetch=0,
            grid=(n_pad // tm, n_pad // tk),            # rows x source blocks
            in_specs=[
                pl.BlockSpec((tm, tk), lambda i, k: (i, k)),      # A tile (int8)
                pl.BlockSpec((tk, F_PAD), lambda i, k: (k, 0)),   # z column tile
                pl.BlockSpec((1, F_PAD), lambda i, k: (0, 0)),    # bias (resident)
                pl.BlockSpec((tm, 1), lambda i, k: (i, 0)),       # dis, target tile
            ],
            out_specs=pl.BlockSpec((tm, F_PAD), lambda i, k: (i, 0)),
            scratch_shapes=[pltpu.VMEM((tm, F_PAD), jnp.float32)],
        ),
        compiler_params=pltpu.CompilerParams(
            dimension_semantics=("parallel", "arbitrary"),
            vmem_limit_bytes=vmem_limit,
        ),
    )(a, z, b_pad, dis)


def _pad_lanes(m, f_pad=F_PAD):
    """Zero-pad the (tiny) last dim to a lane-dense width."""
    n, f = m.shape
    return jnp.zeros((n, f_pad), jnp.float32).at[:, :f].set(m)


def gcn_sigm_forward(x, edge_index, params, *, tm=None, tk=None):
    """x: [N, 9] float32, edge_index: [2, E] int32.  Returns [N, 2] float32."""
    n, f_in = x.shape

    # --- tile sizes: ~512 per dim is the HBM-roofline sweet spot; shrink for tiny N.
    tk = 512 if tk is None else tk
    tk = max(128, (min(tk, _round_up(n, 128)) // 128) * 128)
    tm = 512 if tm is None else tm
    tm = max(8, (min(tm, _round_up(n, 8)) // 8) * 8)
    n_pad = _round_up(n, math.lcm(tm, tk))
    vmem_limit = _vmem_limit_bytes()

    # --- glue: dense (A + I) as int8 (0/1 exact); padded rows/cols stay zero ---
    src = edge_index[0].astype(jnp.int32)
    dst = edge_index[1].astype(jnp.int32)
    a = jnp.zeros((n_pad, n_pad), jnp.int8)
    a = a.at[dst, src].set(jnp.int8(1))                 # row = target, col = source
    diag = jnp.arange(n, dtype=jnp.int32)
    a = a.at[diag, diag].set(jnp.int8(1))               # self loops (real nodes only)

    # --- glue: D^{-1/2} (row-sum of A+I); padded rows get 0 ---
    deg = jnp.sum(a, axis=1, keepdims=True, dtype=jnp.float32)    # [n_pad, 1]
    dis = jnp.where(deg > 0.0, lax.rsqrt(deg), 0.0)

    w1t = jnp.asarray(params["w1"], jnp.float32).T                 # [9, 4]
    w2t = jnp.asarray(params["w2"], jnp.float32).T                 # [4, 2]
    b1p = _pad_lanes(jnp.asarray(params["b1"], jnp.float32).reshape(1, -1))
    b2p = _pad_lanes(jnp.asarray(params["b2"], jnp.float32).reshape(1, -1))

    x_p = jnp.zeros((n_pad, f_in), jnp.float32).at[:n].set(x.astype(jnp.float32))

    # --- layer 1: z1 = dis_src * (x @ W1^T), computed once, lane-padded, bf16 ---
    z1 = _pad_lanes(dis * jnp.dot(x_p, w1t)).astype(jnp.bfloat16)
    h1_pad = _gcn_aggregate(a, z1, b1p, dis, apply_sigmoid=True,
                            tm=tm, tk=tk, vmem_limit=vmem_limit)
    h1 = h1_pad[:, : w1t.shape[1]]                                 # [n_pad, 4]

    # --- layer 2: z2 = dis_src * (h1 @ W2^T) ---
    z2 = _pad_lanes(dis * jnp.dot(h1, w2t)).astype(jnp.bfloat16)
    out_pad = _gcn_aggregate(a, z2, b2p, dis, apply_sigmoid=False,
                             tm=tm, tk=tk, vmem_limit=vmem_limit)
    return out_pad[:n, : w2t.shape[1]]


def init_params(key):
    """Deterministic glorot-uniform weights / zero biases (GCNConv shapes)."""
    k1, k2 = jax.random.split(key)

    def glorot(k, out_c, in_c):
        limit = (6.0 / (in_c + out_c)) ** 0.5
        return jax.random.uniform(k, (out_c, in_c), jnp.float32, -limit, limit)

    return {
        "w1": glorot(k1, 4, 9),                 # GCNConv(9, 4) weight [out, in]
        "b1": jnp.zeros((4,), jnp.float32),
        "w2": glorot(k2, 2, 4),                 # GCNConv(4, 2) weight [out, in]
        "b2": jnp.zeros((2,), jnp.float32),
    }


def reference_forward(x, edge_index, params):
    """Pure-JAX (f32) reference for validation."""
    n = x.shape[0]
    src, dst = edge_index[0], edge_index[1]
    a = jnp.zeros((n, n), jnp.float32).at[dst, src].set(1.0)
    a = jnp.maximum(a, jnp.eye(n, dtype=jnp.float32))
    deg = a.sum(axis=1)
    dis = jnp.where(deg > 0, 1.0 / jnp.sqrt(deg), 0.0)
    a_hat = dis[:, None] * a * dis[None, :]
    h = jax.nn.sigmoid(a_hat @ (x @ params["w1"].T) + params["b1"])
    return a_hat @ (h @ params["w2"].T) + params["b2"]


if __name__ == "__main__":
    key = jax.random.PRNGKey(0)
    kx, kp = jax.random.split(key)

    # small graph: 200 nodes on an undirected ring, node features of dim 9
    n_nodes = 200
    x = jax.random.normal(kx, (n_nodes, 9), jnp.float32)
    fwd = jnp.arange(n_nodes, dtype=jnp.int32)
    nxt = (fwd + 1) % n_nodes
    edge_index = jnp.stack(
        [jnp.concatenate([fwd, nxt]), jnp.concatenate([nxt, fwd])], axis=0
    )  # [2, 400]

    params = init_params(kp)

    # tm=64, tk=128 -> n_pad=256, grid=(4, 2): exercises both the row-parallel and
    # the K-accumulator axes on this small graph. At real sizes leave tm/tk=None
    # (defaults to ~512x512 tiles sized against the per-generation VMEM budget).
    out = gcn_sigm_forward(x, edge_index, params, tm=64, tk=128)
    out = jax.block_until_ready(out)

    ref = reference_forward(x, edge_index, params)
    assert out.shape == (n_nodes, 2)
    # z is carried in bf16 (A is exact 0/1 int8/bf16), so allow bf16-level error.
    max_err = float(jnp.max(jnp.abs(out - ref)))
    assert jnp.allclose(out, ref, atol=2e-2, rtol=2e-2), f"max abs err {max_err}"

    print("KERNEL_OK")
</pallas_src>

<mosaic_0001>
module attributes {stable_mosaic.version = 11 : i64} {
  func.func @gcn_agg_kernel(%arg0: i32, %arg1: i32, %arg2: memref<64x128xi8, #tpu.memory_space<vmem>>, %arg3: memref<128x128xbf16, #tpu.memory_space<vmem>>, %arg4: memref<1x128xf32, #tpu.memory_space<vmem>>, %arg5: memref<64x1xf32, #tpu.memory_space<vmem>>, %arg6: memref<64x128xf32, #tpu.memory_space<vmem>>, %arg7: memref<64x128xf32, #tpu.memory_space<vmem>>) attributes {dimension_semantics = [#tpu.dimension_semantics<parallel>, #tpu.dimension_semantics<arbitrary>], iteration_bounds = array<i64: 4, 2>, scalar_prefetch = 0 : i64, scratch_operands = 1 : i64, tpu.core_type = #tpu.core_type<tc>, window_params = [{transform_indices = @transform_0, window_bounds = array<i64: 64, 128>}, {transform_indices = @transform_1, window_bounds = array<i64: 128, 128>}, {pipeline_mode = #tpu.pipeline_mode<synchronous>, transform_indices = @transform_2, window_bounds = array<i64: 1, 128>}, {transform_indices = @transform_3, window_bounds = array<i64: 64, 1>}, {transform_indices = @transform_4, window_bounds = array<i64: 64, 128>}]} {
    %c0_i32 = arith.constant 0 : i32
    %0 = arith.cmpi eq, %arg1, %c0_i32 : i32
    %1 = arith.extui %0 : i1 to i32
    %c0_i32_0 = arith.constant 0 : i32
    %2 = arith.cmpi ne, %1, %c0_i32_0 : i32
    scf.if %2 {
      %cst_9 = arith.constant 0.000000e+00 : f32
      %13 = vector.broadcast %cst_9 : f32 to vector<64x128xf32>
      %c0_10 = arith.constant 0 : index
      %c0_11 = arith.constant 0 : index
      %14 = vector.load %arg7[%c0_10, %c0_11] : memref<64x128xf32, #tpu.memory_space<vmem>>, vector<64x128xf32>
      tpu.vector_store %arg7[%c0_10, %c0_11], %13 {strides = array<i32>} : memref<64x128xf32, #tpu.memory_space<vmem>>, vector<64x128xf32>,
    } else {
    }
    %c0 = arith.constant 0 : index
    %c0_1 = arith.constant 0 : index
    %3 = vector.load %arg2[%c0, %c0_1] : memref<64x128xi8, #tpu.memory_space<vmem>>, vector<64x128xi8>
    %4 = arith.sitofp %3 : vector<64x128xi8> to vector<64x128xbf16>
    %c0_2 = arith.constant 0 : index
    %c0_3 = arith.constant 0 : index
    %5 = vector.load %arg7[%c0_2, %c0_3] : memref<64x128xf32, #tpu.memory_space<vmem>>, vector<64x128xf32>
    %c0_4 = arith.constant 0 : index
    %c0_5 = arith.constant 0 : index
    %6 = vector.load %arg3[%c0_4, %c0_5] : memref<128x128xbf16, #tpu.memory_space<vmem>>, vector<128x128xbf16>
    %cst = arith.constant dense<0.000000e+00> : vector<64x128xf32>
    %7 = tpu.matmul %4, %6, %cst {dimension_numbers = #tpu.dot_dimension_numbers<[1], [0], [0], [1], [0, 0, 1, 1], [], []>} : vector<64x128xbf16>, vector<128x128xbf16>, vector<64x128xf32> -> vector<64x128xf32>
    %8 = arith.addf %5, %7 : vector<64x128xf32>
    %c0_6 = arith.constant 0 : index
    %c0_7 = arith.constant 0 : index
    %9 = vector.load %arg7[%c0_6, %c0_7] : memref<64x128xf32, #tpu.memory_space<vmem>>, vector<64x128xf32>
    tpu.vector_store %arg7[%c0_6, %c0_7], %8 {strides = array<i32>} : memref<64x128xf32, #tpu.memory_space<vmem>>, vector<64x128xf32>,
    %c1_i32 = arith.constant 1 : i32
    %10 = arith.cmpi eq, %arg1, %c1_i32 : i32
    %11 = arith.extui %10 : i1 to i32
    %c0_i32_8 = arith.constant 0 : i32
    %12 = arith.cmpi ne, %11, %c0_i32_8 : i32
    scf.if %12 {
      %c0_9 = arith.constant 0 : index
      %c0_10 = arith.constant 0 : index
      %13 = vector.load %arg5[%c0_9, %c0_10] : memref<64x1xf32, #tpu.memory_space<vmem>>, vector<64x1xf32>
      %c0_11 = arith.constant 0 : index
      %c0_12 = arith.constant 0 : index
      %14 = vector.load %arg7[%c0_11, %c0_12] : memref<64x128xf32, #tpu.memory_space<vmem>>, vector<64x128xf32>
      %15 = vector.broadcast %13 : vector<64x1xf32> to vector<64x128xf32>
      %16 = arith.mulf %15, %14 : vector<64x128xf32>
      %c0_13 = arith.constant 0 : index
      %c0_14 = arith.constant 0 : index
      %17 = vector.load %arg4[%c0_13, %c0_14] : memref<1x128xf32, #tpu.memory_space<vmem>>, vector<1x128xf32>
      %18 = vector.broadcast %17 : vector<1x128xf32> to vector<64x128xf32>
      %19 = arith.addf %16, %18 : vector<64x128xf32>
      %20 = arith.negf %19 : vector<64x128xf32>
      %21 = math.exp %20 : vector<64x128xf32>
      %cst_15 = arith.constant 1.000000e+00 : f32
      %22 = vector.broadcast %cst_15 : f32 to vector<64x128xf32>
      %23 = arith.addf %22, %21 : vector<64x128xf32>
      %24 = arith.divf %22, %23 : vector<64x128xf32>
      %c0_16 = arith.constant 0 : index
      %c0_17 = arith.constant 0 : index
      %25 = vector.load %arg6[%c0_16, %c0_17] : memref<64x128xf32, #tpu.memory_space<vmem>>, vector<64x128xf32>
      tpu.vector_store %arg6[%c0_16, %c0_17], %24 {strides = array<i32>} : memref<64x128xf32, #tpu.memory_space<vmem>>, vector<64x128xf32>,
    } else {
    }
    return
  }
  func.func @transform_0(%arg0: i32, %arg1: i32) -> (i32, i32) {
    %c0_i32 = arith.constant 0 : i32
    return %arg0, %arg1 : i32, i32
  }
  func.func @transform_1(%arg0: i32, %arg1: i32) -> (i32, i32) {
    %c0_i32 = arith.constant 0 : i32
    %c0_i32_0 = arith.constant 0 : i32
    return %arg1, %c0_i32 : i32, i32
  }
  func.func @transform_2(%arg0: i32, %arg1: i32) -> (i32, i32) {
    %c0_i32 = arith.constant 0 : i32
    %c0_i32_0 = arith.constant 0 : i32
    %c0_i32_1 = arith.constant 0 : i32
    return %c0_i32, %c0_i32_0 : i32, i32
  }
  func.func @transform_3(%arg0: i32, %arg1: i32) -> (i32, i32) {
    %c0_i32 = arith.constant 0 : i32
    %c0_i32_0 = arith.constant 0 : i32
    return %arg0, %c0_i32 : i32, i32
  }
  func.func @transform_4(%arg0: i32, %arg1: i32) -> (i32, i32) {
    %c0_i32 = arith.constant 0 : i32
    %c0_i32_0 = arith.constant 0 : i32
    return %arg0, %c0_i32 : i32, i32
  }
}

</mosaic_0001>

<bundles_post_ra>
// kernel: tpu_custom_call.1
= control target key start
LH: loop header
LB: loop body
LE: loop exit
PB: predicated region body
PF: predicated region fallthrough
CT: control target
= control target key end

     0   :  { %s1313_s0 = inlined_call_operand.vmem [shape: s8[256,256], index: 0, kind: input, shape index: {}]   ;;  %s1314_s1 = inlined_call_operand.vmem [shape: bf16[256,128], index: 1, kind: input, shape index: {}]   ;;  %s1315_s2 = inlined_call_operand.vmem [shape: f32[1,128], index: 2, kind: input, shape index: {}]   ;;  %s1316_s3 = inlined_call_operand.vmem [shape: f32[256,1], index: 3, kind: input, shape index: {}]   ;;  %s1317_s4 = inlined_call_operand.hbm [shape: f32[256,128], index: 4, kind: output, shape index: {}]  }
   0x1   :  { %1321 = sst [smem:[#allocation9_spill]] %s1313_s0 }
   0x2   :  { %9 = vsyncpa [#allocation5], 0 }
   0x3   :  { %11 = vsyncpa [#allocation5 + $0x1], 0  ;;  %s1094_s15 = smov 0   ;;  %s1096_s16 = smov 0  }
   0x4   :  { %s1098_s17 = smov 0   ;;  %s1100_s18 = smov 0  }
   0x5   :  { %s1102_s19 = smov 0   ;;  %s1104_s20 = smov 0  }
   0x6   :  { %s1106_s21 = smov 0   ;;  %s1108_s22 = smov 0  }
   0x7   :  { %s1110_s23 = smov 0   ;;  %s1112_s24 = smov 0  }
   0x8 LB: > { %s728_s25 = sadd.s32 4294967295, %s1062_s24   ;;  %s729_s26 = sadd.s32 4294967294, %s1062_s24   ;;  %s1062_s24 = sphi %s1112_s24, %s17_s24   ;;  %s1058_s23 = sphi %s1110_s23, %s1339_s23   ;;  %s1054_s22 = sphi %s1108_s22, %s1338_s22   ;;  %s1050_s21 = sphi %s1106_s21, %s1337_s21   ;;  %s1046_s20 = sphi %s1104_s20, %s1336_s20   ;;  %s1042_s19 = sphi %s1102_s19, %s1335_s19   ;;  %s1038_s18 = sphi %s1100_s18, %s1334_s18   ;;  %s1034_s17 = sphi %s1098_s17, %s1333_s17   ;;  %s1030_s16 = sphi %s1096_s16, %s1332_s16   ;;  %s1026_s15 = sphi %s1094_s15, %s1331_s15  }
   0x9   : > { %s26_s27 = sadd.s32 1, %s1054_s22  ;;  %s29_s28 = sadd.s32 1, %s1058_s23 }
   0xa   : > { %p27_p0 = scmp.ge.s32.totalorder %s26_s27, 2  ;;  %s38_s29 = sadd.s32 1, %s1042_s19 }
   0xb   : > { %p45_p1 = scmp.ne.s32.totalorder %s1042_s19, %s1038_s18  ;;  %p46_p2 = scmp.eq.s32.totalorder %s1062_s24, 0 }
   0xc   : > { %s1341_s27 = smov (%p27_p0, %s26_s27), 0  ;;  %s1343_s28 = smov (!%p27_p0, %s29_s28), %s1058_s23 }
   0xd   : > { %1322 = sst [smem:[#allocation7_spill]] %s1341_s27  ;;  %s34_s30 = ssub.s32 %s1054_s22, %s1341_s27 }
   0xe   : > { %p1157_p3 = por %p46_p2, %p45_p1  ;;  %p31_p4 = scmp.ge.s32.totalorder %s1343_s28, 4 }
   0xf   : > { %s137_s6 = sadd.s32 1, %s1034_s17  ;;  %p147_p5 = scmp.ne.s32.totalorder %s1034_s17, %s1030_s16 }
  0x10   : > { %p148_p6 = scmp.eq.s32.totalorder %s728_s25, 7  ;;  %s1345_s28 = smov (%p31_p4, %s1343_s28), 0 }
  0x11   : > { %1324 = sst [smem:[#allocation8_spill]] %s1345_s28  ;;  %p153_p8 = scmp.ne.s32.totalorder %s1030_s16, %s1026_s15 }
  0x12   : > { %p1166_p7 = por %p148_p6, %p147_p5  ;;  %s33_s8 = ssub.s32 %s1058_s23, %s1345_s28 }
  0x13   : > { %p154_p9 = scmp.eq.s32.totalorder %s729_s26, 7  ;;  %s35_s9 = sor.u32 %s34_s30, %s33_s8 }
  0x14   : > { %p135_p10 = scmp.eq.s32.totalorder %s33_s8, 0  ;;  %p36_p11 = scmp.eq.s32.totalorder %s35_s9, 0 }
  0x15   : > { %p1174_p12 = por %p154_p9, %p153_p8  ;;  %p731_p13 = scmp.ge.s32.totalorder %s1062_s24, 8 }
  0x16   : > { %s1179_s11 = scalar_select %p135_p10, %s1034_s17, %s137_s6  }
  0x17   : > { %s1182_s12 = scalar_select %p36_p11, %s1042_s19, %s38_s29  }
  0x18   : > { %173 = sbr.rel (%p731_p13) target bundleno = 40 (0x28), region = 20 }
  0x1d   : > { %176 = sbr.rel (!%p1157_p3) target bundleno = 40 (0x28), region = 24  ;;  %s178_s13 = sand.u32 (%p1157_p3), 1, %s1042_s19  }
  0x1e   : > { %s767_s14 = sshll.u32 (%p1157_p3), %s1058_s23, 2  ;;  %s732_s25 = sshll.u32 (%p1157_p3), %s178_s13, 4 }
  0x1f   : > { %s183_s26 = sadd.s32 (%p1157_p3), %s1054_s22, %s767_s14  ;;  %s1327_s0 = sld [smem:[#allocation9_spill]] (%p1157_p3) }
  0x20   : > { %s735_s30 = sshll.u32 (%p1157_p3), %s183_s26, 3  ;;  %s180_s29 = scalar_lea.vmem (%p1157_p3), [#allocation3], %s732_s25 }
  0x25   : > { %s185_s6 = scalar_lea.vmem %s1327_s0, %s735_s30 }
  0x26   : > { %v216_v0 = vld [vmem:[%s185_s6] sm:$0xff]  ;;  %v218_v1 = vld [vmem:[%s185_s6 + $0x10] sm:$0xff] }
  0x27   : > { %217 = vst [vmem:[%s180_s29] sm:$0xff] %v216_v0  ;;  %219 = vst [vmem:[%s180_s29 + $0x8] sm:$0xff] %v218_v1 }
  0x28 PF: > { %p736_p0 = scmp.ge.s32.totalorder %s1062_s24, 1  ;;  %p242_p1 = scmp.lt.s32.totalorder %s1062_s24, 9 }
  0x2a   : > { %p243_p2 = pnand %p736_p0, %p242_p1 }
  0x2b   : > { %s249_s5 = sand.u32 (!%p243_p2), 1, %s1038_s18   ;;  %s1320_s13 = sand.u32 (!%p243_p2), 1, %s1030_s16  }
  0x2c   : > { %246 = sbr.rel (%p243_p2) target bundleno = 498 (0x1f2), region = 70  ;;  %s1197_s14 = sshll.u32 (!%p243_p2), %s249_s5, 4 }
  0x2d   : > { %s738_s25 = sshll.u32 (!%p243_p2), %s1320_s13, 6  ;;  %s739_s26 = sshll.u32 (!%p243_p2), %s1046_s20, 4 }
  0x2e   : > { %s741_s30 = sshll.u32 (!%p243_p2), %s1050_s21, 3  ;;  %p286_p3 = scmp.lt.s32.totalorder (!%p243_p2), %s739_s26, 31 }
  0x2f   : > { %p292_p4 = scmp.lt.s32.totalorder (!%p243_p2), %s741_s30, 31  ;;  %s251_s27 = scalar_lea.vmem (!%p243_p2), [#allocation3], %s1197_s14 }
  0x30   : > { %s1214_s13 = scalar_lea.vmem (!%p243_p2), [#allocation4], %s738_s25  ;;  %p743_p5 = scmp.ne.s32.totalorder (!%p243_p2), %s1046_s20, 0 }
  0x31   : > { %s1347_s26 = smov (!%p286_p3, %s739_s26), 31  ;;  %s1349_s30 = smov (!%p292_p4, %s741_s30), 31 }
  0x32   : > { %s740_s8 = sshll.u32 %s1347_s26, 2  ;;  %s742_s0 = sshll.u32 %s1349_s30, 3 }
  0x33   : > { %s1206_s29 = scalar_lea.vmem %s1314_s1, %s740_s8  ;;  %s1211_s5 = scalar_lea.vmem %s1316_s3, %s742_s0 }
  0x34   : > { %302 = sbr.rel (%p743_p5) target bundleno = 62 (0x3e), region = 78 }
  0x39   : > { %v1064_v2 = vmov 0.0  }
  0x3a   : > { %303 = vst [vmem:[#allocation2 + $0x30] sm:$0xff] %v1064_v2  ;;  %304 = vst [vmem:[#allocation2] sm:$0xff] %v1064_v2 }
  0x3b   : > { %305 = vst [vmem:[#allocation2 + $0x18] sm:$0xff] %v1064_v2  ;;  %306 = vst [vmem:[#allocation2 + $0x10] sm:$0xff] %v1064_v2 }
  0x3c   : > { %307 = vst [vmem:[#allocation2 + $0x8] sm:$0xff] %v1064_v2  ;;  %308 = vst [vmem:[#allocation2 + $0x20] sm:$0xff] %v1064_v2 }
  0x3d   : > { %309 = vst [vmem:[#allocation2 + $0x28] sm:$0xff] %v1064_v2  ;;  %310 = vst [vmem:[#allocation2 + $0x38] sm:$0xff] %v1064_v2 }
  0x3e PF: > { %v912_v3 = vld [vmem:[%s1206_s29 + $0x38] sm:$0xff]   ;;  %v913_v4 = vld [vmem:[%s1206_s29 + $0x30] sm:$0xff]   ;;  %v914_v5 = vld [vmem:[%s1206_s29 + $0x28] sm:$0xff]   ;;  %p752_p6 = scmp.ne.s32.totalorder %s1046_s20, 1 }
  0x3f   : > { %781 = vmatprep.subr.bf16.mxu0 %v912_v3  ;;  %805 = vmatprep.subr.bf16.mxu1 %v912_v3  ;;  %v915_v6 = vld [vmem:[%s1206_s29 + $0x20] sm:$0xff]   ;;  %v312_v8 = vld [vmem:[%s251_s27 + $0x8] sm:$0xff]  ;;  %v917_v12 = vld [vmem:[%s1206_s29 + $0x10] sm:$0xff]  }
  0x40   : > { %782 = vmatpush3.bf16.msra.mxu0 %v912_v3  ;;  %813 = vmatpush3.bf16.msra.mxu1 %v912_v3  ;;  %v311_v7 = vld [vmem:[%s251_s27] sm:$0xff]  ;;  %v315_v10 = vunpack.c.l.s8.bf16 %v312_v8  ;;  %v916_v11 = vld [vmem:[%s1206_s29 + $0x18] sm:$0xff]   ;;  %v918_v13 = vld [vmem:[%s1206_s29 + $0x8] sm:$0xff]   ;;  %v316_v16 = vunpack.c.h.s8.bf16 %v312_v8 }
  0x41   : > { %783 = vmatprep.subr.bf16.mxu0 %v913_v4  ;;  %806 = vmatprep.subr.bf16.mxu1 %v913_v4  ;;  %v313_v9 = vunpack.c.l.s8.bf16 %v311_v7  ;;  %v919_v14 = vld [vmem:[%s1206_s29] sm:$0xff]   ;;  %v314_v15 = vunpack.c.h.s8.bf16 %v311_v7  ;;  %v317_v21 = vld [vmem:[#allocation2 + $0x30] sm:$0xff] }
  0x42   : > { %801 = vmatprep.mubr.bf16.mxu1 %v315_v10  ;;  %v319_v17 = vld [vmem:[#allocation2 + $0x18] sm:$0xff]  ;;  %v320_v27 = vld [vmem:[#allocation2 + $0x10] sm:$0xff]  ;;  %v318_v33 = vld [vmem:[#allocation2] sm:$0xff] }
  0x43   : > { %797 = vmatprep.mubr.bf16.mxu0 %v313_v9  ;;  %v321_v22 = vld [vmem:[#allocation2 + $0x8] sm:$0xff]  ;;  %v322_v34 = vld [vmem:[#allocation2 + $0x20] sm:$0xff] }
  0x44   : > { %784 = vmatpush3.bf16.msra.mxu0 %v913_v4  ;;  %814 = vmatpush3.bf16.msra.mxu1 %v913_v4  ;;  %v323_v18 = vld [vmem:[#allocation2 + $0x28] sm:$0xff]  ;;  %v324_v28 = vld [vmem:[#allocation2 + $0x38] sm:$0xff] }
  0x45   : > { %785 = vmatprep.subr.bf16.mxu0 %v914_v5  ;;  %807 = vmatprep.subr.bf16.mxu1 %v914_v5 }
  0x48   : > { %786 = vmatpush3.bf16.msra.mxu0 %v914_v5  ;;  %815 = vmatpush3.bf16.msra.mxu1 %v914_v5 }
  0x49   : > { %787 = vmatprep.subr.bf16.mxu0 %v915_v6  ;;  %808 = vmatprep.subr.bf16.mxu1 %v915_v6 }
  0x4c   : > { %788 = vmatpush3.bf16.msra.mxu0 %v915_v6  ;;  %816 = vmatpush3.bf16.msra.mxu1 %v915_v6 }
  0x4d   : > { %789 = vmatprep.subr.bf16.mxu0 %v916_v11  ;;  %809 = vmatprep.subr.bf16.mxu1 %v916_v11 }
  0x50   : > { %790 = vmatpush3.bf16.msra.mxu0 %v916_v11  ;;  %817 = vmatpush3.bf16.msra.mxu1 %v916_v11 }
  0x51   : > { %791 = vmatprep.subr.bf16.mxu0 %v917_v12  ;;  %810 = vmatprep.subr.bf16.mxu1 %v917_v12 }
  0x54   : > { %792 = vmatpush3.bf16.msra.mxu0 %v917_v12  ;;  %818 = vmatpush3.bf16.msra.mxu1 %v917_v12 }
  0x55   : > { %793 = vmatprep.subr.bf16.mxu0 %v918_v13  ;;  %811 = vmatprep.subr.bf16.mxu1 %v918_v13 }
  0x58   : > { %794 = vmatpush3.bf16.msra.mxu0 %v918_v13  ;;  %819 = vmatpush3.bf16.msra.mxu1 %v918_v13 }
  0x59   : > { %795 = vmatprep.subr.bf16.mxu0 %v919_v14  ;;  %812 = vmatprep.subr.bf16.mxu1 %v919_v14 }
  0x5c   : > { %796 = vmatpush3.bf16.msra.mxu0 %v919_v14  ;;  %820 = vmatpush3.bf16.msra.mxu1 %v919_v14 }
  0x5f   : > { %798 = vmatmul.mubr.bf16.vlgmr.msra.gmra.mxu0 %v314_v15  ;;  %802 = vmatmul.mubr.bf16.vlgmr.msra.gmra.mxu1 %v316_v16 }
 0x11f   : > { %v799_v19 = vpop.f32.mrf.mxu0  ;;  %v803_v20 = vpop.f32.mrf.mxu1 }
 0x120   : > { %v456_v23 = vadd.f32 %v799_v19, %v319_v17  ;;  %v460_v24 = vadd.f32 %v803_v20, %v323_v18 }
 0x121   : > { %v423_v25 = vpop.f32.mrf.mxu0  ;;  %v439_v26 = vpop.f32.mrf.mxu1 }
 0x122   : > { %464 = vst [vmem:[#allocation2 + $0x18] sm:$0xff] %v456_v23  ;;  %468 = vst [vmem:[#allocation2 + $0x28] sm:$0xff] %v460_v24  ;;  %v454_v29 = vadd.f32 %v423_v25, %v317_v21  ;;  %v458_v30 = vadd.f32 %v439_v26, %v321_v22 }
 0x123   : > { %v800_v31 = vpop.f32.mrf.mxu0  ;;  %v804_v32 = vpop.f32.mrf.mxu1 }
 0x124   : > { %462 = vst [vmem:[#allocation2 + $0x30] sm:$0xff] %v454_v29  ;;  %466 = vst [vmem:[#allocation2 + $0x8] sm:$0xff] %v458_v30  ;;  %v457_v35 = vadd.f32 %v800_v31, %v320_v27  ;;  %v461_v36 = vadd.f32 %v804_v32, %v324_v28  ;;  %473 = sbr.rel (%p752_p6) target bundleno = 473 (0x1d9), region = 82 }
 0x125   : > { %v426_v37 = vpop.f32.mrf.mxu0  ;;  %v442_v38 = vpop.f32.mrf.mxu1 }
 0x126   : > { %465 = vst [vmem:[#allocation2 + $0x10] sm:$0xff] %v457_v35  ;;  %469 = vst [vmem:[#allocation2 + $0x38] sm:$0xff] %v461_v36  ;;  %v455_v39 = vadd.f32 %v426_v37, %v318_v33  ;;  %v459_v40 = vadd.f32 %v442_v38, %v322_v34 }
 0x128   : > { %463 = vst [vmem:[#allocation2] sm:$0xff] %v455_v39  ;;  %467 = vst [vmem:[#allocation2 + $0x20] sm:$0xff] %v459_v40 }
 0x129   : > { %v476_v41 = vld [vmem:[%s1211_s5 + $0x10] sm:$0xff]  ;;  %v474_v42 = vld [vmem:[%s1211_s5] sm:$0xff]  ;;  %v1065_v43 = vmov 0   ;;  %v477_v44 = vld [vmem:[%s1211_s5 + $0x18] sm:$0xff] }
 0x12a   : > { %921 = vset.pattern.permute.xlu1 %v1065_v43  ;;  %920 = vset.pattern.permute.xlu0 %v1065_v43  ;;  %v475_v45 = vld [vmem:[%s1211_s5 + $0x8] sm:$0xff]  ;;  %v478_v47 = vld [vmem:[%s1211_s5 + $0x20] sm:$0xff]  ;;  %v481_v48 = vld [vmem:[%s1211_s5 + $0x38] sm:$0xff] }
 0x12b   : > { %502 = vperm.xlu1 %921, %v476_v41   ;;  %492 = vperm.xlu0 %920, %v474_v42   ;;  %v479_v46 = vld [vmem:[%s1211_s5 + $0x28] sm:$0xff]  ;;  %v480_v49 = vld [vmem:[%s1211_s5 + $0x30] sm:$0xff]  ;;  %v484_v50 = vld [vmem:[#allocation2 + $0x18] sm:$0xff] }
 0x12c   : > { %v482_v51 = vld [vmem:[#allocation2 + $0x30] sm:$0xff]  ;;  %v753_v52 = vld [vmem:[%s1315_s2] ss:$0 sm:$0xff]  ;;  %v486_v4 = vld [vmem:[#allocation2 + $0x8] sm:$0xff] }
 0x12d   : > { %v485_v57 = vld [vmem:[#allocation2 + $0x10] sm:$0xff]  ;;  %v489_v13 = vld [vmem:[#allocation2 + $0x38] sm:$0xff]  ;;  %v488_v14 = vld [vmem:[#allocation2 + $0x28] sm:$0xff] }
 0x12f   : > { %507 = vperm.xlu1 %921, %v477_v44   ;;  %497 = vperm.xlu0 %920, %v475_v45   ;;  %v483_v58 = vld [vmem:[#allocation2] sm:$0xff] }
 0x130   : > { %v487_v3 = vld [vmem:[#allocation2 + $0x20] sm:$0xff] }
 0x133   : > { %517 = vperm.xlu1 %921, %v479_v46   ;;  %512 = vperm.xlu0 %920, %v478_v47  }
 0x137   : > { %527 = vperm.xlu1 %921, %v481_v48   ;;  %522 = vperm.xlu0 %920, %v480_v49  }
 0x1a6   : > { %v503_v53 = vpop.permute.xlu1 %502  ;;  %v493_v54 = vpop.permute.xlu0 %492 }
 0x1a7   : > { %v532_v55 = vmul.f32 %v503_v53, %v484_v50  ;;  %v530_v56 = vmul.f32 %v493_v54, %v482_v51 }
 0x1a9   : > { %v547_v59 = vadd.f32 %v753_v52, %v532_v55  ;;  %v545_v60 = vadd.f32 %v753_v52, %v530_v56 }
 0x1aa   : > { %v508_v61 = vpop.permute.xlu1 %507  ;;  %v498_v62 = vpop.permute.xlu0 %497 }
 0x1ab   : > { %v756_v63 = vmul.f32 -1.442695, %v547_v59  ;;  %v754_v0 = vmul.f32 -1.442695, %v545_v60  ;;  %v533_v1 = vmul.f32 %v508_v61, %v485_v57  ;;  %v531_v2 = vmul.f32 %v498_v62, %v483_v58 }
 0x1ad   : > { %922 = vpow2.f32 %v756_v63  ;;  %v548_v5 = vadd.f32 %v753_v52, %v533_v1  ;;  %v546_v6 = vadd.f32 %v753_v52, %v531_v2 }
 0x1ae   : > { %924 = vpow2.f32 %v754_v0  ;;  %v518_v7 = vpop.permute.xlu1 %517  ;;  %v513_v8 = vpop.permute.xlu0 %512 }
 0x1af   : > { %v757_v9 = vmul.f32 -1.442695, %v548_v5  ;;  %v755_v10 = vmul.f32 -1.442695, %v546_v6  ;;  %v535_v11 = vmul.f32 %v518_v7, %v487_v3  ;;  %v534_v12 = vmul.f32 %v513_v8, %v486_v4 }
 0x1b1   : > { %926 = vpow2.f32 %v757_v9  ;;  %v550_v15 = vadd.f32 %v753_v52, %v535_v11  ;;  %v549_v16 = vadd.f32 %v753_v52, %v534_v12 }
 0x1b2   : > { %928 = vpow2.f32 %v755_v10  ;;  %v528_v17 = vpop.permute.xlu1 %527  ;;  %v523_v18 = vpop.permute.xlu0 %522 }
 0x1b3   : > { %v759_v19 = vmul.f32 -1.442695, %v550_v15  ;;  %v758_v20 = vmul.f32 -1.442695, %v549_v16  ;;  %v537_v21 = vmul.f32 %v528_v17, %v489_v13  ;;  %v536_v22 = vmul.f32 %v523_v18, %v488_v14 }
 0x1b5   : > { %930 = vpow2.f32 %v759_v19  ;;  %v552_v23 = vadd.f32 %v753_v52, %v537_v21  ;;  %v551_v24 = vadd.f32 %v753_v52, %v536_v22 }
 0x1b6   : > { %932 = vpow2.f32 %v758_v20 }
 0x1b7   : > { %v761_v25 = vmul.f32 -1.442695, %v552_v23  ;;  %v760_v26 = vmul.f32 -1.442695, %v551_v24 }
 0x1b9   : > { %934 = vpow2.f32 %v761_v25 }
 0x1ba   : > { %v923_v27 = vpop.eup %922  ;;  %936 = vpow2.f32 %v760_v26 }
 0x1bb   : > { %v925_v28 = vpop.eup %924  ;;  %v579_v29 = vadd.f32 1.0, %v923_v27 }
 0x1bc   : > { %v577_v30 = vadd.f32 1.0, %v925_v28 }
 0x1bd   : > { %938 = vrcp.f32 %v579_v29 }
 0x1be   : > { %v927_v31 = vpop.eup %926  ;;  %940 = vrcp.f32 %v577_v30 }
 0x1bf   : > { %v929_v32 = vpop.eup %928  ;;  %v580_v33 = vadd.f32 1.0, %v927_v31 }
 0x1c0   : > { %v578_v34 = vadd.f32 1.0, %v929_v32 }
 0x1c1   : > { %942 = vrcp.f32 %v580_v33 }
 0x1c2   : > { %v931_v35 = vpop.eup %930  ;;  %944 = vrcp.f32 %v578_v34 }
 0x1c3   : > { %v933_v36 = vpop.eup %932  ;;  %v582_v37 = vadd.f32 1.0, %v931_v35 }
 0x1c4   : > { %v581_v38 = vadd.f32 1.0, %v933_v36 }
 0x1c5   : > { %946 = vrcp.f32 %v582_v37 }
 0x1c6   : > { %v935_v39 = vpop.eup %934  ;;  %948 = vrcp.f32 %v581_v38 }
 0x1c7   : > { %v937_v40 = vpop.eup %936  ;;  %v584_v41 = vadd.f32 1.0, %v935_v39 }
 0x1c8   : > { %v583_v42 = vadd.f32 1.0, %v937_v40 }
 0x1c9   : > { %950 = vrcp.f32 %v584_v41 }
 0x1ca   : > { %v939_v43 = vpop.eup %938  ;;  %952 = vrcp.f32 %v583_v42 }
 0x1cb   : > { %v941_v44 = vpop.eup %940  ;;  %603 = vst [vmem:[%s1214_s13 + $0x10] sm:$0xff] %v939_v43 }
 0x1cc   : > { %601 = vst [vmem:[%s1214_s13] sm:$0xff] %v941_v44 }
 0x1ce   : > { %v943_v45 = vpop.eup %942 }
 0x1cf   : > { %v945_v46 = vpop.eup %944  ;;  %604 = vst [vmem:[%s1214_s13 + $0x18] sm:$0xff] %v943_v45 }
 0x1d0   : > { %602 = vst [vmem:[%s1214_s13 + $0x8] sm:$0xff] %v945_v46 }
 0x1d2   : > { %v947_v47 = vpop.eup %946 }
 0x1d3   : > { %v949_v48 = vpop.eup %948  ;;  %606 = vst [vmem:[%s1214_s13 + $0x28] sm:$0xff] %v947_v47 }
 0x1d4   : > { %605 = vst [vmem:[%s1214_s13 + $0x20] sm:$0xff] %v949_v48 }
 0x1d6   : > { %v951_v49 = vpop.eup %950 }
 0x1d7   : > { %v953_v50 = vpop.eup %952  ;;  %608 = vst [vmem:[%s1214_s13 + $0x38] sm:$0xff] %v951_v49 }
 0x1d8   : > { %607 = vst [vmem:[%s1214_s13 + $0x30] sm:$0xff] %v953_v50 }
 0x1d9 PF: > { %s768_s27 = sshll.u32 %s1050_s21, 10  ;;  %s623_s26 = sshll.u32 %s1214_s13, 4  ;;  %s1252_s26 = int_to_ptr.vmem [resolvable:$true] %s623_s26 }
 0x1da   : > { %s1249_s25 = scalar_lea.hbm %s1317_s4, %s768_s27  ;;  %s1328_s30 = sand.u32 1, %s1030_s16  }
 0x1db   : > { %s1256_s8 = scalar_lea.sflag [#allocation5], %s1328_s30  ;;  %s954_s9 = scalar_lea.vmem %s1252_s26, 1024 }
 0x1dc   : > { %p955_p8 = scmp.ne.s32.totalorder %s1252_s26, %s954_s9  ;;  %s1066_s21 = smov [#allocation4]  }
 0x1dd   : > { %s958_s6 = sshll.u32 %s1066_s21, 4  ;;  %s959_s6 = int_to_ptr.vmem [resolvable:$false] %s958_s6 }
 0x1de   : > { %p956_p9 = pnand %p955_p8, %p1166_p7  ;;  %s960_s29 = scalar_lea.vmem %s959_s6, 2048 }
 0x1df   : > { %p961_p11 = scmp.lt.s32.totalorder %s1252_s26, %s959_s6  ;;  %p962_p13 = scmp.lt.s32.totalorder %s960_s29, %s954_s9 }
 0x1e0   : > { %p957_p10 = pneg %p956_p9 }
 0x1e1   : > { %p963_p0 = por %p962_p13, %p961_p11 }
 0x1e3   : > { %p964_p1 = pnand %p963_p0, %p957_p10 }
 0x1e5   : > { %967 = shalt.err (!%p964_p1)
}
 0x1e6   : > { %s968_s13 = scalar_lea.hbm %s1249_s25, 1024  ;;  %s972_s0 = scalar_lea.hbm %s1317_s4, 4096 }
 0x1e7   : > { %p969_p2 = scmp.ne.s32.totalorder %s1249_s25, %s968_s13  ;;  %p973_p5 = scmp.lt.s32.totalorder %s1249_s25, %s1317_s4 }
 0x1e8   : > { %p974_p6 = scmp.lt.s32.totalorder %s972_s0, %s968_s13 }
 0x1e9   : > { %p970_p3 = pnand %p969_p2, %p1166_p7 }
 0x1ea   : > { %p975_p8 = por %p974_p6, %p973_p5 }
 0x1eb   : > { %p971_p4 = pneg %p970_p3 }
 0x1ed   : > { %p976_p9 = pnand %p975_p8, %p971_p4 }
 0x1ef   : > { %979 = shalt.err (!%p976_p9)
}
 0x1f0   : > { %s1067_s28 = smov 128   ;;  %s1068_s14 = smov 8  }
 0x1f1   : > { %821 = dma.vmem_to_hbm [thread:$0]  (%p1166_p7), %s1252_s26, 1024, %s1249_s25, %s1256_s8, %s1067_s28, %s1067_s28, %s1068_s14  }
 0x1f2 PF: > { %p827_p10 = scmp.ge.s32.totalorder %s1062_s24, 2  ;;  %s638_s30 = sand.u32 1, %s1026_s15  }
 0x1f3   : > { %s639_s9 = scalar_lea.sflag [#allocation5], %s638_s30 }
 0x1f4   : > { %p824_p11 = pnand %p827_p10, %p1174_p12 }
 0x1f6   : > { %p825_p13 = pneg %p824_p11 }
 0x1f8   : > { %1021 = dma.done.wait (%p825_p13), %s639_s9, 1024  }
 0x1f9   : > { %1023 = vsyncadd (%p825_p13), %s639_s9, 4294966272  ;;  %s17_s24 = sadd.s32 1, %s1062_s24   ;;  %s1329_s7 = sld [smem:[#allocation7_spill]] }
 0x1fa   : > { %p14_p0 = scmp.ge.s32.totalorder %s17_s24, 10   ;;  %s1330_s25 = sld [smem:[#allocation8_spill]] }
 0x1fb   : > { %s1331_s15 = smov %s1030_s16  ;;  %s1332_s16 = smov %s1034_s17 }
 0x1fc   : > { %s1333_s17 = smov %s1179_s11  ;;  %s1334_s18 = smov %s1042_s19 }
 0x1fd   : > { %s1335_s19 = smov %s1182_s12  ;;  %s1336_s20 = smov %s1054_s22 }
 0x1fe   : > { %s1337_s21 = smov %s1058_s23  ;;  %16 = sbr.rel (!%p14_p0) target bundleno = 8 (0x8), region = 128 }
 0x1ff   : > { %s1338_s22 = smov %s1329_s7 }
 0x200   : > { %s1339_s23 = smov %s1330_s25 }
 0x203   :  { %644 = vsyncpa [#allocation5], 1 }
 0x204   :  { %646 = vsyncpa [#allocation5 + $0x1], 1 }

</bundles_post_ra>
